<compile_context>
chip_gen: v5e
topology: v5e:2x2
jax: 0.10.0
libtpu: 0.0.40
codegen_flags: <defaults>
</compile_context>

<pallas_src>
import jax
import jax.numpy as jnp
from jax import lax
from jax.experimental import pallas as pl
from jax.experimental.pallas import tpu as pltpu


# ---------------------------------------------------------------------------
# Small-B (grid-less) kernels: the whole problem is a single VMEM tile.
# ---------------------------------------------------------------------------

def _toplayer_kernel_small_c1(x_ref, w_ref, o_ref):
    # x: (B, F), w: (1, F) -> o: (B, 1).
    # VPU broadcast-multiply + XLU lane reduce; the MXU would be <1% occupied at N=1
    # and we'd still pay the vmatmul push + result-FIFO pop.
    x = x_ref[...]
    w = w_ref[...]                       # (1, F) broadcasts along sublanes
    # dtype=f32 keeps the accumulation in f32 even if x/w ever arrive as bf16.
    o_ref[...] = jnp.sum(x * w, axis=-1, keepdims=True,
                         dtype=jnp.float32).astype(o_ref.dtype)


def _toplayer_kernel_small_general(x_ref, w_ref, o_ref):
    # x: (B, F), w: (C, F) -> o: (B, C).  Contract feature axes on the MXU, f32 acc.
    o_ref[...] = lax.dot_general(
        x_ref[...], w_ref[...],
        dimension_numbers=(((1,), (1,)), ((), ())),
        preferred_element_type=jnp.float32,
    ).astype(o_ref.dtype)


# ---------------------------------------------------------------------------
# Large-B (tiled, streaming) kernel: lane-dense (C, BLK) output.
# ---------------------------------------------------------------------------

def _toplayer_kernel_tiled(x_ref, w_ref, o_ref):
    # x: (BLK, F), w: (C, F) -> o: (C, BLK).  Batch lives on the lane axis of the
    # output, so the writeback is unmasked full-width vst (no 128x-padded tiles).
    o_ref[...] = lax.dot_general(
        w_ref[...], x_ref[...],
        dimension_numbers=(((1,), (1,)), ((), ())),
        preferred_element_type=jnp.float32,
    ).astype(o_ref.dtype)


# ---------------------------------------------------------------------------
# Wrapper
# ---------------------------------------------------------------------------

def mimiciii_lstm_toplayer(x, weight, dropout_p=0.0, *,
                           block_rows=8192, small_b_rows=1024):
    """x: (B, F); weight: (C, F) (native PyTorch nn.Linear layout). Returns (B, C) f32.

    Matches `self.classifier(self.dropout(x))` with p=0.0 / eval-mode dropout.
    """
    # TODO(synk): training-mode dropout (p > 0) not implemented; identity for p=0.0.
    assert dropout_p == 0.0
    B, F = x.shape
    C, Fw = weight.shape
    assert F == Fw

    cost = pl.CostEstimate(
        flops=2 * B * F * C,
        bytes_accessed=(B * F + F * C + B * C) * 4,
        transcendentals=0,
    )

    if B <= small_b_rows:
        # Launch-overhead-dominated regime: one grid-less call, full-array VMEM
        # residency (<= ~256 KiB of x), no pipeline prologue/epilogue, no double
        # buffers.  Keep the native-layout (B, C) output here -- it's tiny.
        kernel = _toplayer_kernel_small_c1 if C == 1 else _toplayer_kernel_small_general
        return pl.pallas_call(
            kernel,
            out_shape=jax.ShapeDtypeStruct((B, C), jnp.float32),
            in_specs=[
                pl.BlockSpec(memory_space=pltpu.MemorySpace.VMEM),
                pl.BlockSpec(memory_space=pltpu.MemorySpace.VMEM),
            ],
            out_specs=pl.BlockSpec(memory_space=pltpu.MemorySpace.VMEM),
            cost_estimate=cost,
        )(x, weight)

    # Streaming path: strictly HBM-read-bound.  A (BLK, 64) f32 x tile occupies
    # BLK*512 B in VMEM after 64->128 lane padding; BLK=8192 -> 4 MiB per tile,
    # ~8 MiB double-buffered -- comfortably inside v7x's 64 MiB and under v5e's
    # 16 MiB default scoped-VMEM limit.
    if B <= block_rows:
        blk = B                              # single block; block dims equal array dims
    else:
        blk = max(128, (block_rows // 128) * 128)   # lane-aligned output tile width
    grid = (pl.cdiv(B, blk),)                # ragged last block handled by masked writeback

    out_cb = pl.pallas_call(
        _toplayer_kernel_tiled,
        out_shape=jax.ShapeDtypeStruct((C, B), jnp.float32),
        grid=grid,
        in_specs=[
            pl.BlockSpec((blk, F), lambda i: (i, 0)),
            pl.BlockSpec((C, F), lambda i: (0, 0)),   # 4 KiB weight: DMA once, revisit
        ],
        out_specs=pl.BlockSpec((C, blk), lambda i: (0, i)),
        compiler_params=pltpu.CompilerParams(
            dimension_semantics=("parallel",),        # shard batch grid over v7x's 2 TCs
        ),
        cost_estimate=cost,
    )(x, weight)

    if C == 1:
        return out_cb.reshape(B, 1)          # free relayout for a single class
    # TODO(synk): for C > 1, prefer consuming the lane-dense (C, B) layout downstream
    # instead of paying this transpose.
    return out_cb.T


if __name__ == "__main__":
    linear_size = 64
    nb_classes = 1

    key = jax.random.PRNGKey(0)
    kx, kw, kx2 = jax.random.split(key, 3)

    # nn.Linear weight shape: (nb_classes, linear_size), kaiming-uniform-ish init.
    bound = 1.0 / jnp.sqrt(jnp.float32(linear_size))
    weight = jax.random.uniform(
        kw, (nb_classes, linear_size), dtype=jnp.float32, minval=-bound, maxval=bound
    )

    # 1) Tiny standalone case (module as typically used): grid-less VPU+XLU path.
    batch = 8
    x = jax.random.normal(kx, (batch, linear_size), dtype=jnp.float32)
    out = jax.block_until_ready(mimiciii_lstm_toplayer(x, weight))
    ref = x @ weight.T
    assert out.shape == (batch, nb_classes)
    assert jnp.allclose(out, ref, atol=1e-5, rtol=1e-5)

    # 2) Streaming (tiled, lane-dense output) path, exercised at reduced sizes;
    #    300 % 128 != 0 also checks the ragged-last-block masked writeback.
    batch2 = 300
    x2 = jax.random.normal(kx2, (batch2, linear_size), dtype=jnp.float32)
    out2 = jax.block_until_ready(
        mimiciii_lstm_toplayer(x2, weight, block_rows=128, small_b_rows=64)
    )
    ref2 = x2 @ weight.T
    assert out2.shape == (batch2, nb_classes)
    assert jnp.allclose(out2, ref2, atol=1e-5, rtol=1e-5)

    print("KERNEL_OK")
</pallas_src>

<mosaic_0001>
module attributes {stable_mosaic.version = 11 : i64} {
  func.func @_toplayer_kernel_small_c1(%arg0: memref<8x64xf32, #tpu.memory_space<vmem>>, %arg1: memref<1x64xf32, #tpu.memory_space<vmem>>, %arg2: memref<8x1xf32, #tpu.memory_space<vmem>>) attributes {dimension_semantics = [], scalar_prefetch = 0 : i64, scratch_operands = 0 : i64, tpu.core_type = #tpu.core_type<tc>} {
    %c0 = arith.constant 0 : index
    %c0_0 = arith.constant 0 : index
    %0 = vector.load %arg0[%c0, %c0_0] : memref<8x64xf32, #tpu.memory_space<vmem>>, vector<8x64xf32>
    %c0_1 = arith.constant 0 : index
    %c0_2 = arith.constant 0 : index
    %1 = vector.load %arg1[%c0_1, %c0_2] : memref<1x64xf32, #tpu.memory_space<vmem>>, vector<1x64xf32>
    %2 = vector.broadcast %1 : vector<1x64xf32> to vector<8x64xf32>
    %3 = arith.mulf %0, %2 : vector<8x64xf32>
    %cst = arith.constant dense<0.000000e+00> : vector<8xf32>
    %4 = vector.multi_reduction <add>, %3, %cst [1] : vector<8x64xf32> to vector<8xf32>
    %5 = vector.shape_cast %4 : vector<8xf32> to vector<8x1xf32>
    %c0_3 = arith.constant 0 : index
    %c0_4 = arith.constant 0 : index
    %6 = vector.load %arg2[%c0_3, %c0_4] : memref<8x1xf32, #tpu.memory_space<vmem>>, vector<8x1xf32>
    tpu.vector_store %arg2[%c0_3, %c0_4], %5 {strides = array<i32>} : memref<8x1xf32, #tpu.memory_space<vmem>>, vector<8x1xf32>,
    return
  }
}

</mosaic_0001>

<bundles_post_ra>
// kernel: tpu_custom_call.1
= control target key start
LH: loop header
LB: loop body
LE: loop exit
PB: predicated region body
PF: predicated region fallthrough
CT: control target
= control target key end

     0   :  { %7 = vsyncpa [#allocation3], 0  ;;  %s138_s0 = inlined_call_operand.hbm [shape: f32[8,64], index: 0, kind: input, shape index: {}]   ;;  %s139_s1 = inlined_call_operand.hbm [shape: f32[1,64], index: 1, kind: input, shape index: {}]   ;;  %s140_s2 = inlined_call_operand.vmem [shape: f32[8,1], index: 2, kind: output, shape index: {}]  }
   0x1   :  { %s14_s11 = sshll.u32 %s138_s0, 4  ;;  %s15_s11 = int_to_ptr.hbm [resolvable:$true] %s14_s11 }
   0x2   :  { %8 = vsyncpa [#allocation5], 0  ;;  %s112_s12 = smov [#allocation2]   ;;  %s25_s16 = sshll.u32 %s139_s1, 4  ;;  %s26_s16 = int_to_ptr.hbm [resolvable:$true] %s25_s16 }
   0x3   :  { %s16_s13 = sshll.u32 %s112_s12, 4  ;;  %s113_s17 = smov [#allocation4]   ;;  %s17_s13 = int_to_ptr.vmem [resolvable:$true] %s16_s13 }
   0x4   :  { %19 = dma.hbm_to_vmem [thread:$0]  %s15_s11, 128, %s17_s13, [#allocation3]  }
   0x5   :  { %s27_s18 = sshll.u32 %s113_s17, 4  ;;  %s28_s18 = int_to_ptr.vmem [resolvable:$true] %s27_s18 }
   0x6   :  { %30 = dma.hbm_to_vmem [thread:$0]  %s26_s16, 16, %s28_s18, [#allocation5]  }
   0x7   :  { %108 = dma.done.wait [#allocation3], 128  }
   0x8   :  { %109 = vsyncadd [#allocation3], 4294967168 }
   0x9   :  { %110 = dma.done.wait [#allocation5], 16  }
   0xa   :  { %111 = vsyncadd [#allocation5], 4294967280  ;;  %v39_v0 = vld [vmem:[#allocation2] sm:$0xff]  ;;  %v59_v1 = vld [vmem:[#allocation4] ss:$0 sm:$0xff]  ;;  %vm45_vm0 = vcmask 523264  }
   0xb   :  { %v44_v2 = vmul.f32 %v59_v1, %v39_v0  ;;  %vm49_vm1 = vcmask 7168  }
   0xd   :  { %v46_v3 = vsel %vm45_vm0, %v44_v2, 0.0 }
   0xe   :  { %47 = vadd.xlane.f32.xlu0 %v46_v3 }
  0x81   :  { %v48_v4 = vpop.xlane.xlu0 %47 }
  0x82   :  { %50 = vst.msk [vmem:[%s140_s2] sm:$0xff] %vm49_vm1, %v48_v4 }
  0x83   :  { %55 = vsyncpa [#allocation3], 1 }
  0x84   :  { %56 = vsyncpa [#allocation5], 1 }

</bundles_post_ra>
